<compile_context>
chip_gen: v6e
topology: v6e:2x2x1
jax: 0.10.0
libtpu: 0.0.40
codegen_flags: <defaults>
</compile_context>

<pallas_src>
from functools import partial

import jax
import jax.numpy as jnp
import numpy as np
from jax.experimental import pallas as pl
from jax.experimental.pallas import tpu as pltpu


def _round_up(x, m):
    return (x + m - 1) // m * m


def _pick_tile(total, target, quantum=1):
    """Largest divisor of `total` that is a multiple of `quantum` and <= target."""
    if total <= target:
        return total
    best = None
    t = quantum
    while t <= target:
        if total % t == 0:
            best = t
        t += quantum
    return best if best is not None else total


def deep_biaffine_kernel(x1_ref, x2_ref, w1t_ref, b1_ref, w2t_ref, b2_ref,
                         wb_ref, out_ref, h1_s, h2t_s):
    # Per grid step:
    #   x1_ref : (1, TL1, D1) bf16     x2_ref : (1, L2, D2) bf16
    #   w1t_ref: (D1, HP)   bf16       b1_ref : (1, HP)     f32   (same on side 2)
    #   wb_ref : (HP, TO*HP) bf16      fused effective bilinear weight, col = oo*HP + c
    #   out_ref: (1, TO, TL1, L2) f32
    #   h1_s   : (TL1, HP) bf16 scratch,  h2t_s: (HP, L2) bf16 scratch
    o_tile = pl.program_id(2)

    # Hidden projections are (n, l1)-only work: do them once per (n, l1) on the first
    # o-tile and cache in scratch (o is the innermost, "arbitrary" grid axis).
    @pl.when(o_tile == 0)
    def _():
        # bias-add + ReLU stay in f32 on the VPU (v5e has no bf16 VPU); results are
        # cast to bf16 only as MXU operands for the bilinear stages.
        h1 = jnp.dot(x1_ref[0], w1t_ref[...], preferred_element_type=jnp.float32)
        h1 = jnp.maximum(h1 + b1_ref[...], 0.0)
        h1_s[...] = h1.astype(h1_s.dtype)
        h2 = jnp.dot(x2_ref[0], w2t_ref[...], preferred_element_type=jnp.float32)
        h2 = jnp.maximum(h2 + b2_ref[...], 0.0)
        # Store h2 pre-transposed so the per-class second stage is a plain jnp.dot
        # with no transpose in the inner loop.
        h2t_s[...] = h2.T.astype(h2t_s.dtype)

    # First bilinear stage for this o-tile: ONE wide bf16 MXU matmul, f32 accumulation.
    t = jnp.dot(h1_s[...], wb_ref[...],
                preferred_element_type=jnp.float32)          # (TL1, TO*HP) f32

    hp = h1_s.shape[1]
    to = out_ref.shape[1]
    # TO is small and static; slices of `t` are 128-aligned lane windows (HP % 128 == 0).
    for oo in range(to):
        t_o = t[:, oo * hp:(oo + 1) * hp].astype(h2t_s.dtype)          # (TL1, HP)
        out_ref[0, oo] = jnp.dot(t_o, h2t_s[...],
                                 preferred_element_type=jnp.float32)   # (TL1, L2)


@partial(jax.jit, static_argnames=("native_layout", "tl1_target", "to_target"))
def deep_biaffine_scorer(x1, x2, params, *, native_layout=False,
                         tl1_target=256, to_target=8):
    W1, b1 = params["W1"], params["b1"]
    W2, b2 = params["W2"], params["b2"]
    Wb = params["Wb"]                                   # (H+1, H+1, O)

    N, L1, D1 = x1.shape
    _, L2, D2 = x2.shape
    H = W1.shape[0]
    Ha = H + 1
    O = Wb.shape[-1]
    HP = max(_round_up(Ha, 128), 128)                   # lane-aligned hidden width

    TL1 = _pick_tile(L1, tl1_target, quantum=8)
    TO = _pick_tile(O, to_target, quantum=1)
    n_l1 = L1 // TL1
    n_o = O // TO

    f32, bf16 = jnp.float32, jnp.bfloat16

    # --- fold the "+1" feature and lane padding into the Linear layers --------------
    #   column H     : zero weights, bias 1  -> relu(1) = 1   (the ones feature)
    #   columns  > H : zero weights, bias 0  -> relu(0) = 0   (inert padding)
    w1t = jnp.zeros((D1, HP), f32).at[:, :H].set(W1.T.astype(f32)).astype(bf16)
    b1e = jnp.zeros((1, HP), f32).at[0, :H].set(b1.astype(f32)).at[0, H].set(1.0)
    w2t = jnp.zeros((D2, HP), f32).at[:, :H].set(W2.T.astype(f32)).astype(bf16)
    b2e = jnp.zeros((1, HP), f32).at[0, :H].set(b2.astype(f32)).at[0, H].set(1.0)

    # --- fused, lane-padded effective bilinear weight --------------------------------
    # W_eff[a, c, o] = Wb.reshape(Ha, O, Ha)[a, o, c]  (PairwiseBilinear's reindexing).
    # Pad a/c to HP with zeros (padded h entries are 0, contribute nothing) and flatten
    # (o, c) into lanes so per-class slices inside the kernel are 128-aligned.
    w_aoc = Wb.reshape(Ha, O, Ha).astype(f32)                    # [a, o, c]
    w_pad = jnp.zeros((HP, O, HP), f32).at[:Ha, :, :Ha].set(w_aoc)
    wb_flat = w_pad.reshape(HP, O * HP).astype(bf16)             # col index = o*HP + c

    x1b = x1.astype(bf16)
    x2b = x2.astype(bf16)

    # VMEM budget estimate (blocks + scratch + live intermediate), with headroom;
    # capped at 48 MiB so the same configuration fits v7x's 64 MiB physical VMEM.
    est = (2 * (TL1 * D1 + L2 * D2) * 2                # x blocks (bf16, double-buffered)
           + (D1 * HP + D2 * HP) * 2 + 2 * HP * 4      # single-buffered weights/biases
           + 2 * (HP * TO * HP) * 2                    # wb block (bf16, double-buffered)
           + 2 * (TO * TL1 * L2) * 4                   # out block (f32, double-buffered)
           + (TL1 * HP + HP * L2) * 2                  # scratch
           + TL1 * TO * HP * 4)                        # live intermediate t
    vmem_limit = int(min(max(2 * est, 32 * 1024 * 1024), 48 * 1024 * 1024))

    const2 = lambda n, l1, o: (0, 0)

    out = pl.pallas_call(
        deep_biaffine_kernel,
        out_shape=jax.ShapeDtypeStruct((N, O, L1, L2), f32),
        grid_spec=pltpu.PrefetchScalarGridSpec(
            num_scalar_prefetch=0,
            grid=(N, n_l1, n_o),
            in_specs=[
                pl.BlockSpec((1, TL1, D1), lambda n, l1, o: (n, l1, 0)),
                pl.BlockSpec((1, L2, D2), lambda n, l1, o: (n, 0, 0)),
                # Grid-invariant Linear weights/biases: constant index_map and
                # single-buffered (halves their VMEM footprint; no re-DMA anyway).
                pl.BlockSpec((D1, HP), const2, pipeline_mode=pl.Buffered(1)),
                pl.BlockSpec((1, HP), const2, pipeline_mode=pl.Buffered(1)),
                pl.BlockSpec((D2, HP), const2, pipeline_mode=pl.Buffered(1)),
                pl.BlockSpec((1, HP), const2, pipeline_mode=pl.Buffered(1)),
                # Fused bilinear weight varies along the o grid axis -> keep default
                # double-buffering so its DMA pipelines with compute.
                pl.BlockSpec((HP, TO * HP), lambda n, l1, o: (0, o)),
            ],
            out_specs=pl.BlockSpec((1, TO, TL1, L2),
                                   lambda n, l1, o: (n, o, l1, 0)),
            scratch_shapes=[
                pltpu.VMEM((TL1, HP), bf16),    # cached h1 for the current (n, l1)
                pltpu.VMEM((HP, L2), bf16),     # cached h2^T (depends only on n; cheap
                                                # to refresh per l1 tile, keeps l1 parallel)
            ],
        ),
        compiler_params=pltpu.CompilerParams(
            # n and l1 tiles are independent (megacore-shardable on v7x); the o axis
            # carries the h1/h2 scratch and must stay sequential.
            dimension_semantics=("parallel", "parallel", "arbitrary"),
            vmem_limit_bytes=vmem_limit,
        ),
    )(x1b, x2b, w1t, b1e, w2t, b2e, wb_flat)

    if native_layout:
        # Kernel-native (N, O, L1, L2): no extra HBM round-trip (perf review item).
        return out
    # PyTorch module layout (N, L1, L2, O).
    return jnp.transpose(out, (0, 2, 3, 1))


def reference(x1, x2, params):
    """Pure-JAX transliteration of the PyTorch forward (op-for-op), in f32."""
    W1, b1, W2, b2, Wb = (params["W1"], params["b1"], params["W2"],
                          params["b2"], params["Wb"])
    h1 = jax.nn.relu(x1 @ W1.T + b1)
    h2 = jax.nn.relu(x2 @ W2.T + b2)
    h1a = jnp.concatenate([h1, jnp.ones(h1.shape[:-1] + (1,), h1.dtype)], axis=-1)
    h2a = jnp.concatenate([h2, jnp.ones(h2.shape[:-1] + (1,), h2.dtype)], axis=-1)
    N, L1, D1a = h1a.shape
    _, L2, D2a = h2a.shape
    O = Wb.shape[-1]
    inter = h1a.reshape(-1, D1a) @ Wb.reshape(D1a, D2a * O)       # (N*L1, D2a*O)
    out = jnp.matmul(inter.reshape(N, L1 * O, D2a),
                     jnp.transpose(h2a, (0, 2, 1)))               # (N, L1*O, L2)
    out = out.reshape(N, L1, O, L2).transpose(0, 1, 3, 2)         # (N, L1, L2, O)
    return out


if __name__ == "__main__":
    def run_case(key, N, L1, L2, D1, D2, H, O, **tiles):
        ks = jax.random.split(key, 7)
        x1 = jax.random.normal(ks[0], (N, L1, D1), jnp.float32)
        x2 = jax.random.normal(ks[1], (N, L2, D2), jnp.float32)
        # Deterministic non-zero params; the module zero-inits the biaffine weight
        # for training, which would make the test trivial.
        params = dict(
            W1=jax.random.normal(ks[2], (H, D1), jnp.float32) * 0.1,
            b1=jax.random.normal(ks[3], (H,), jnp.float32) * 0.1,
            W2=jax.random.normal(ks[4], (H, D2), jnp.float32) * 0.1,
            b2=jax.random.normal(ks[5], (H,), jnp.float32) * 0.1,
            Wb=jax.random.normal(ks[6], (H + 1, H + 1, O), jnp.float32) * 0.1,
        )
        ref = reference(x1, x2, params)

        out = jax.block_until_ready(deep_biaffine_scorer(x1, x2, params, **tiles))
        assert out.shape == (N, L1, L2, O), out.shape
        # bf16 MXU operands with f32 accumulation -> relaxed tolerance vs f32 ref.
        np.testing.assert_allclose(np.asarray(out), np.asarray(ref),
                                   rtol=2e-2, atol=2e-2)

        # Kernel-native layout path (no wrapper output transpose).
        out_n = jax.block_until_ready(
            deep_biaffine_scorer(x1, x2, params, native_layout=True, **tiles))
        np.testing.assert_allclose(np.asarray(out_n),
                                   np.asarray(jnp.transpose(ref, (0, 3, 1, 2))),
                                   rtol=2e-2, atol=2e-2)

    key = jax.random.PRNGKey(0)
    k1, k2 = jax.random.split(key)
    # Small single-tile case.
    run_case(k1, N=2, L1=8, L2=8, D1=32, D2=32, H=32, O=4)
    # Multi-tile grid case (exercises the L1- and O-tile index maps and scratch reuse).
    run_case(k2, N=2, L1=16, L2=8, D1=24, D2=40, H=48, O=6, tl1_target=8, to_target=3)
    print("KERNEL_OK")
</pallas_src>

<mosaic_0001>
module attributes {stable_mosaic.version = 11 : i64} {
  func.func @deep_biaffine_kernel(%arg0: i32, %arg1: i32, %arg2: i32, %arg3: memref<1x8x32xbf16, #tpu.memory_space<vmem>>, %arg4: memref<1x8x32xbf16, #tpu.memory_space<vmem>>, %arg5: memref<32x128xbf16, #tpu.memory_space<vmem>>, %arg6: memref<1x128xf32, #tpu.memory_space<vmem>>, %arg7: memref<32x128xbf16, #tpu.memory_space<vmem>>, %arg8: memref<1x128xf32, #tpu.memory_space<vmem>>, %arg9: memref<128x512xbf16, #tpu.memory_space<vmem>>, %arg10: memref<1x4x8x8xf32, #tpu.memory_space<vmem>>, %arg11: memref<8x128xbf16, #tpu.memory_space<vmem>>, %arg12: memref<128x8xbf16, #tpu.memory_space<vmem>>) attributes {dimension_semantics = [#tpu.dimension_semantics<parallel>, #tpu.dimension_semantics<parallel>, #tpu.dimension_semantics<arbitrary>], iteration_bounds = array<i64: 2, 1, 1>, scalar_prefetch = 0 : i64, scratch_operands = 2 : i64, tpu.core_type = #tpu.core_type<tc>, window_params = [{transform_indices = @transform_0, window_bounds = array<i64: 1, 8, 32>}, {transform_indices = @transform_1, window_bounds = array<i64: 1, 8, 32>}, {pipeline_mode = #tpu.pipeline_mode<synchronous>, transform_indices = @transform_2, window_bounds = array<i64: 32, 128>}, {pipeline_mode = #tpu.pipeline_mode<synchronous>, transform_indices = @transform_3, window_bounds = array<i64: 1, 128>}, {pipeline_mode = #tpu.pipeline_mode<synchronous>, transform_indices = @transform_4, window_bounds = array<i64: 32, 128>}, {pipeline_mode = #tpu.pipeline_mode<synchronous>, transform_indices = @transform_5, window_bounds = array<i64: 1, 128>}, {transform_indices = @transform_6, window_bounds = array<i64: 128, 512>}, {transform_indices = @transform_7, window_bounds = array<i64: 1, 4, 8, 8>}]} {
    %c0_i32 = arith.constant 0 : i32
    %0 = arith.cmpi eq, %arg2, %c0_i32 : i32
    %1 = arith.extui %0 : i1 to i32
    %c0_i32_0 = arith.constant 0 : i32
    %2 = arith.cmpi ne, %1, %c0_i32_0 : i32
    scf.if %2 {
      %c0_29 = arith.constant 0 : index
      %c0_30 = arith.constant 0 : index
      %c0_31 = arith.constant 0 : index
      %34 = vector.load %arg3[%c0_29, %c0_30, %c0_31] : memref<1x8x32xbf16, #tpu.memory_space<vmem>>, vector<1x8x32xbf16>
      %35 = vector.shape_cast %34 : vector<1x8x32xbf16> to vector<8x32xbf16>
      %c0_32 = arith.constant 0 : index
      %c0_33 = arith.constant 0 : index
      %36 = vector.load %arg5[%c0_32, %c0_33] : memref<32x128xbf16, #tpu.memory_space<vmem>>, vector<32x128xbf16>
      %cst_34 = arith.constant dense<0.000000e+00> : vector<8x128xf32>
      %37 = tpu.matmul %35, %36, %cst_34 {dimension_numbers = #tpu.dot_dimension_numbers<[1], [0], [0], [1], [0, 0, 1, 1], [], []>} : vector<8x32xbf16>, vector<32x128xbf16>, vector<8x128xf32> -> vector<8x128xf32>
      %c0_35 = arith.constant 0 : index
      %c0_36 = arith.constant 0 : index
      %38 = vector.load %arg6[%c0_35, %c0_36] : memref<1x128xf32, #tpu.memory_space<vmem>>, vector<1x128xf32>
      %39 = vector.broadcast %38 : vector<1x128xf32> to vector<8x128xf32>
      %40 = arith.addf %37, %39 : vector<8x128xf32>
      %cst_37 = arith.constant 0.000000e+00 : f32
      %41 = vector.broadcast %cst_37 : f32 to vector<8x128xf32>
      %42 = arith.maximumf %40, %41 : vector<8x128xf32>
      %43 = arith.truncf %42 : vector<8x128xf32> to vector<8x128xbf16>
      %c0_38 = arith.constant 0 : index
      %c0_39 = arith.constant 0 : index
      %44 = vector.load %arg11[%c0_38, %c0_39] : memref<8x128xbf16, #tpu.memory_space<vmem>>, vector<8x128xbf16>
      tpu.vector_store %arg11[%c0_38, %c0_39], %43 {strides = array<i32>} : memref<8x128xbf16, #tpu.memory_space<vmem>>, vector<8x128xbf16>,
      %c0_40 = arith.constant 0 : index
      %c0_41 = arith.constant 0 : index
      %c0_42 = arith.constant 0 : index
      %45 = vector.load %arg4[%c0_40, %c0_41, %c0_42] : memref<1x8x32xbf16, #tpu.memory_space<vmem>>, vector<1x8x32xbf16>
      %46 = vector.shape_cast %45 : vector<1x8x32xbf16> to vector<8x32xbf16>
      %c0_43 = arith.constant 0 : index
      %c0_44 = arith.constant 0 : index
      %47 = vector.load %arg7[%c0_43, %c0_44] : memref<32x128xbf16, #tpu.memory_space<vmem>>, vector<32x128xbf16>
      %cst_45 = arith.constant dense<0.000000e+00> : vector<8x128xf32>
      %48 = tpu.matmul %46, %47, %cst_45 {dimension_numbers = #tpu.dot_dimension_numbers<[1], [0], [0], [1], [0, 0, 1, 1], [], []>} : vector<8x32xbf16>, vector<32x128xbf16>, vector<8x128xf32> -> vector<8x128xf32>
      %c0_46 = arith.constant 0 : index
      %c0_47 = arith.constant 0 : index
      %49 = vector.load %arg8[%c0_46, %c0_47] : memref<1x128xf32, #tpu.memory_space<vmem>>, vector<1x128xf32>
      %50 = vector.broadcast %49 : vector<1x128xf32> to vector<8x128xf32>
      %51 = arith.addf %48, %50 : vector<8x128xf32>
      %cst_48 = arith.constant 0.000000e+00 : f32
      %52 = vector.broadcast %cst_48 : f32 to vector<8x128xf32>
      %53 = arith.maximumf %51, %52 : vector<8x128xf32>
      %54 = tpu.transpose %53, [1, 0] : vector<8x128xf32> -> vector<128x8xf32>
      %55 = arith.truncf %54 : vector<128x8xf32> to vector<128x8xbf16>
      %c0_49 = arith.constant 0 : index
      %c0_50 = arith.constant 0 : index
      %56 = vector.load %arg12[%c0_49, %c0_50] : memref<128x8xbf16, #tpu.memory_space<vmem>>, vector<128x8xbf16>
      tpu.vector_store %arg12[%c0_49, %c0_50], %55 {strides = array<i32>} : memref<128x8xbf16, #tpu.memory_space<vmem>>, vector<128x8xbf16>,
    } else {
    }
    %c0 = arith.constant 0 : index
    %c0_1 = arith.constant 0 : index
    %3 = vector.load %arg11[%c0, %c0_1] : memref<8x128xbf16, #tpu.memory_space<vmem>>, vector<8x128xbf16>
    %c0_2 = arith.constant 0 : index
    %c0_3 = arith.constant 0 : index
    %4 = vector.load %arg9[%c0_2, %c0_3] : memref<128x512xbf16, #tpu.memory_space<vmem>>, vector<128x512xbf16>
    %cst = arith.constant dense<0.000000e+00> : vector<8x512xf32>
    %5 = tpu.matmul %3, %4, %cst {dimension_numbers = #tpu.dot_dimension_numbers<[1], [0], [0], [1], [0, 0, 1, 1], [], []>} : vector<8x128xbf16>, vector<128x512xbf16>, vector<8x512xf32> -> vector<8x512xf32>
    %6 = vector.extract_strided_slice %5 {offsets = [0, 0], sizes = [8, 128], strides = [1, 1]} : vector<8x512xf32> to vector<8x128xf32>
    %7 = arith.truncf %6 : vector<8x128xf32> to vector<8x128xbf16>
    %c0_4 = arith.constant 0 : index
    %c0_5 = arith.constant 0 : index
    %8 = vector.load %arg12[%c0_4, %c0_5] : memref<128x8xbf16, #tpu.memory_space<vmem>>, vector<128x8xbf16>
    %cst_6 = arith.constant dense<0.000000e+00> : vector<8x8xf32>
    %9 = tpu.matmul %7, %8, %cst_6 {dimension_numbers = #tpu.dot_dimension_numbers<[1], [0], [0], [1], [0, 0, 1, 1], [], []>} : vector<8x128xbf16>, vector<128x8xbf16>, vector<8x8xf32> -> vector<8x8xf32>
    %c0_7 = arith.constant 0 : index
    %c0_8 = arith.constant 0 : index
    %c0_9 = arith.constant 0 : index
    %c0_10 = arith.constant 0 : index
    %10 = vector.load %arg10[%c0_7, %c0_8, %c0_9, %c0_10] : memref<1x4x8x8xf32, #tpu.memory_space<vmem>>, vector<1x1x8x8xf32>
    %11 = vector.shape_cast %10 : vector<1x1x8x8xf32> to vector<8x8xf32>
    %12 = vector.shape_cast %9 : vector<8x8xf32> to vector<1x1x8x8xf32>
    tpu.vector_store %arg10[%c0_7, %c0_8, %c0_9, %c0_10], %12 {strides = array<i32>} : memref<1x4x8x8xf32, #tpu.memory_space<vmem>>, vector<1x1x8x8xf32>,
    %13 = vector.extract_strided_slice %5 {offsets = [0, 128], sizes = [8, 128], strides = [1, 1]} : vector<8x512xf32> to vector<8x128xf32>
    %14 = arith.truncf %13 : vector<8x128xf32> to vector<8x128xbf16>
    %c0_11 = arith.constant 0 : index
    %c0_12 = arith.constant 0 : index
    %15 = vector.load %arg12[%c0_11, %c0_12] : memref<128x8xbf16, #tpu.memory_space<vmem>>, vector<128x8xbf16>
    %cst_13 = arith.constant dense<0.000000e+00> : vector<8x8xf32>
    %16 = tpu.matmul %14, %15, %cst_13 {dimension_numbers = #tpu.dot_dimension_numbers<[1], [0], [0], [1], [0, 0, 1, 1], [], []>} : vector<8x128xbf16>, vector<128x8xbf16>, vector<8x8xf32> -> vector<8x8xf32>
    %c0_14 = arith.constant 0 : index
    %c1 = arith.constant 1 : index
    %c0_15 = arith.constant 0 : index
    %c0_16 = arith.constant 0 : index
    %17 = vector.load %arg10[%c0_14, %c1, %c0_15, %c0_16] : memref<1x4x8x8xf32, #tpu.memory_space<vmem>>, vector<1x1x8x8xf32>
    %18 = vector.shape_cast %17 : vector<1x1x8x8xf32> to vector<8x8xf32>
    %19 = vector.shape_cast %16 : vector<8x8xf32> to vector<1x1x8x8xf32>
    tpu.vector_store %arg10[%c0_14, %c1, %c0_15, %c0_16], %19 {strides = array<i32>} : memref<1x4x8x8xf32, #tpu.memory_space<vmem>>, vector<1x1x8x8xf32>,
    %20 = vector.extract_strided_slice %5 {offsets = [0, 256], sizes = [8, 128], strides = [1, 1]} : vector<8x512xf32> to vector<8x128xf32>
    %21 = arith.truncf %20 : vector<8x128xf32> to vector<8x128xbf16>
    %c0_17 = arith.constant 0 : index
    %c0_18 = arith.constant 0 : index
    %22 = vector.load %arg12[%c0_17, %c0_18] : memref<128x8xbf16, #tpu.memory_space<vmem>>, vector<128x8xbf16>
    %cst_19 = arith.constant dense<0.000000e+00> : vector<8x8xf32>
    %23 = tpu.matmul %21, %22, %cst_19 {dimension_numbers = #tpu.dot_dimension_numbers<[1], [0], [0], [1], [0, 0, 1, 1], [], []>} : vector<8x128xbf16>, vector<128x8xbf16>, vector<8x8xf32> -> vector<8x8xf32>
    %c0_20 = arith.constant 0 : index
    %c2 = arith.constant 2 : index
    %c0_21 = arith.constant 0 : index
    %c0_22 = arith.constant 0 : index
    %24 = vector.load %arg10[%c0_20, %c2, %c0_21, %c0_22] : memref<1x4x8x8xf32, #tpu.memory_space<vmem>>, vector<1x1x8x8xf32>
    %25 = vector.shape_cast %24 : vector<1x1x8x8xf32> to vector<8x8xf32>
    %26 = vector.shape_cast %23 : vector<8x8xf32> to vector<1x1x8x8xf32>
    tpu.vector_store %arg10[%c0_20, %c2, %c0_21, %c0_22], %26 {strides = array<i32>} : memref<1x4x8x8xf32, #tpu.memory_space<vmem>>, vector<1x1x8x8xf32>,
    %27 = vector.extract_strided_slice %5 {offsets = [0, 384], sizes = [8, 128], strides = [1, 1]} : vector<8x512xf32> to vector<8x128xf32>
    %28 = arith.truncf %27 : vector<8x128xf32> to vector<8x128xbf16>
    %c0_23 = arith.constant 0 : index
    %c0_24 = arith.constant 0 : index
    %29 = vector.load %arg12[%c0_23, %c0_24] : memref<128x8xbf16, #tpu.memory_space<vmem>>, vector<128x8xbf16>
    %cst_25 = arith.constant dense<0.000000e+00> : vector<8x8xf32>
    %30 = tpu.matmul %28, %29, %cst_25 {dimension_numbers = #tpu.dot_dimension_numbers<[1], [0], [0], [1], [0, 0, 1, 1], [], []>} : vector<8x128xbf16>, vector<128x8xbf16>, vector<8x8xf32> -> vector<8x8xf32>
    %c0_26 = arith.constant 0 : index
    %c3 = arith.constant 3 : index
    %c0_27 = arith.constant 0 : index
    %c0_28 = arith.constant 0 : index
    %31 = vector.load %arg10[%c0_26, %c3, %c0_27, %c0_28] : memref<1x4x8x8xf32, #tpu.memory_space<vmem>>, vector<1x1x8x8xf32>
    %32 = vector.shape_cast %31 : vector<1x1x8x8xf32> to vector<8x8xf32>
    %33 = vector.shape_cast %30 : vector<8x8xf32> to vector<1x1x8x8xf32>
    tpu.vector_store %arg10[%c0_26, %c3, %c0_27, %c0_28], %33 {strides = array<i32>} : memref<1x4x8x8xf32, #tpu.memory_space<vmem>>, vector<1x1x8x8xf32>,
    return
  }
  func.func @transform_0(%arg0: i32, %arg1: i32, %arg2: i32) -> (i32, i32, i32) {
    %c0_i32 = arith.constant 0 : i32
    %c0_i32_0 = arith.constant 0 : i32
    return %arg0, %arg1, %c0_i32 : i32, i32, i32
  }
  func.func @transform_1(%arg0: i32, %arg1: i32, %arg2: i32) -> (i32, i32, i32) {
    %c0_i32 = arith.constant 0 : i32
    %c0_i32_0 = arith.constant 0 : i32
    %c0_i32_1 = arith.constant 0 : i32
    return %arg0, %c0_i32, %c0_i32_0 : i32, i32, i32
  }
  func.func @transform_2(%arg0: i32, %arg1: i32, %arg2: i32) -> (i32, i32) {
    %c0_i32 = arith.constant 0 : i32
    %c0_i32_0 = arith.constant 0 : i32
    %c0_i32_1 = arith.constant 0 : i32
    return %c0_i32, %c0_i32_0 : i32, i32
  }
  func.func @transform_3(%arg0: i32, %arg1: i32, %arg2: i32) -> (i32, i32) {
    %c0_i32 = arith.constant 0 : i32
    %c0_i32_0 = arith.constant 0 : i32
    %c0_i32_1 = arith.constant 0 : i32
    return %c0_i32, %c0_i32_0 : i32, i32
  }
  func.func @transform_4(%arg0: i32, %arg1: i32, %arg2: i32) -> (i32, i32) {
    %c0_i32 = arith.constant 0 : i32
    %c0_i32_0 = arith.constant 0 : i32
    %c0_i32_1 = arith.constant 0 : i32
    return %c0_i32, %c0_i32_0 : i32, i32
  }
  func.func @transform_5(%arg0: i32, %arg1: i32, %arg2: i32) -> (i32, i32) {
    %c0_i32 = arith.constant 0 : i32
    %c0_i32_0 = arith.constant 0 : i32
    %c0_i32_1 = arith.constant 0 : i32
    return %c0_i32, %c0_i32_0 : i32, i32
  }
  func.func @transform_6(%arg0: i32, %arg1: i32, %arg2: i32) -> (i32, i32) {
    %c0_i32 = arith.constant 0 : i32
    %c0_i32_0 = arith.constant 0 : i32
    return %c0_i32, %arg2 : i32, i32
  }
  func.func @transform_7(%arg0: i32, %arg1: i32, %arg2: i32) -> (i32, i32, i32, i32) {
    %c0_i32 = arith.constant 0 : i32
    %c0_i32_0 = arith.constant 0 : i32
    return %arg0, %arg2, %arg1, %c0_i32 : i32, i32, i32, i32
  }
}

</mosaic_0001>

<bundles_post_ra>
// kernel: deep_biaffine_scorer.1
= control target key start
LH: loop header
LB: loop body
LE: loop exit
PB: predicated region body
PF: predicated region fallthrough
CT: control target
= control target key end

     0   :  { %s1884_s24 = smov 0   ;;  %s1886_s25 = smov 0   ;;  %s2112_s0 = inlined_call_operand.vmem [shape: bf16[2,8,32], index: 0, kind: input, shape index: {}]   ;;  %s2113_s1 = inlined_call_operand.vmem [shape: bf16[2,8,32], index: 1, kind: input, shape index: {}]   ;;  %s2114_s2 = inlined_call_operand.vmem [shape: bf16[32,128], index: 2, kind: input, shape index: {}]   ;;  %s2115_s3 = inlined_call_operand.vmem [shape: f32[1,128], index: 3, kind: input, shape index: {}]   ;;  %s2116_s4 = inlined_call_operand.vmem [shape: bf16[32,128], index: 4, kind: input, shape index: {}]   ;;  %s2117_s5 = inlined_call_operand.vmem [shape: f32[1,128], index: 5, kind: input, shape index: {}]   ;;  %s2118_s6 = inlined_call_operand.vmem [shape: bf16[128,512], index: 6, kind: input, shape index: {}]   ;;  %s2119_s7 = inlined_call_operand.vmem [shape: f32[2,4,8,8], index: 7, kind: output, shape index: {}]  }
   0x1   :  { %s1888_s26 = smov 0  }
   0x2 LB: > { %s36_s27 = sadd.s32 1, %s1835_s25  ;;  %p1453_p0 = scmp.ge.s32.totalorder %s1839_s26, 1  ;;  %s1839_s26 = sphi %s1888_s26, %s17_s26   ;;  %s1835_s25 = sphi %s1886_s25, %s2121_s25   ;;  %s1831_s24 = sphi %s1884_s24, %s2120_s24  }
   0x3   : > { %p38_p1 = scmp.ge.s32.totalorder %s36_s27, 2  ;;  %p284_p2 = scmp.lt.s32.totalorder %s1839_s26, 3 }
   0x5   : > { %s2123_s27 = smov (%p38_p1, %s36_s27), 0  ;;  %p285_p3 = pnand %p1453_p0, %p284_p2 }
   0x6   : > { %p334_p4 = scmp.lt.s32.totalorder (!%p285_p3), %s1831_s24, 1 }
   0x7   : > { %288 = sbr.rel (%p285_p3) target bundleno = 676 (0x2a4), region = 48 }
   0xc   : > { %v1733_v0 = vld [vmem:[%s2116_s4 + $0x8] sm:$0xff]   ;;  %v1841_v1 = vmov 0.0   ;;  %v1734_v2 = vld [vmem:[%s2116_s4] sm:$0xff]   ;;  %vm1842_vm0 = vmmov 0   ;;  %s2125_s24 = smov (!%p334_p4, %s1831_s24), 1  ;;  %vm393_vm1 = vcmask 261120  }
   0xd   : > { %1618 = vmatprep.subr.bf16.mxu1 %v1841_v1  ;;  %1610 = vmatprep.subr.bf16.mxu0 %v1841_v1  ;;  %v1735_v3 = vld [vmem:[%s2114_s2 + $0x8] sm:$0xff]   ;;  %v1736_v4 = vld [vmem:[%s2114_s2] sm:$0xff]   ;;  %s1454_s15 = sshll.u32 %s2125_s24, 2  ;;  %v1843_v33 = vmov 0   ;;  %vm604_vm2 = vcmask 60416   ;;  %s1551_s12 = sshll.u32 %s2125_s24, 5 }
   0xe   : > { %1619 = vmatpush3.bf16.msra.mxu1 %v1733_v0  ;;  %1622 = vmatprep.mubr.msk.bf16.mxu1 %vm1842_vm0, %v1841_v1  ;;  %v1739_v5 = vld [vmem:[%s2118_s6 + $0xe4] ss:$16 sps:$4 sm:$0xff]   ;;  %v1740_v6 = vld [vmem:[%s2118_s6 + $0xe8] ss:$16 sps:$4 sm:$0xff]   ;;  %v1742_v7 = vld [vmem:[%s2118_s6 + $0xec] ss:$16 sps:$4 sm:$0xff]   ;;  %s344_s22 = scalar_lea.vmem %s2113_s1, %s1454_s15  ;;  %s340_s29 = scalar_lea.vmem %s2112_s0, %s1454_s15 }
   0xf   : > { %1620 = vmatprep.subr.bf16.mxu1 %v1841_v1  ;;  %1614 = vmatprep.mubr.msk.bf16.mxu0 %vm1842_vm0, %v1841_v1  ;;  %v1737_v8 = vld [vmem:[%s2118_s6 + $0xe0] ss:$16 sps:$4 sm:$0xff]   ;;  %v1745_v11 = vld [vmem:[%s2118_s6 + $0xc4] ss:$16 sps:$4 sm:$0xff]   ;;  %v1748_v12 = vld [vmem:[%s2118_s6 + $0xcc] ss:$16 sps:$4 sm:$0xff]   ;;  %s362_s15 = scalar_lea.vmem %s2119_s7, %s1551_s12 }
  0x10   : > { %1611 = vmatpush3.bf16.msra.mxu0 %v1735_v3  ;;  %v440_v9 = vld [vmem:[%s344_s22] sm:$0xf]  ;;  %v1746_v14 = vld [vmem:[%s2118_s6 + $0xc8] ss:$16 sps:$4 sm:$0xff]   ;;  %v1751_v15 = vld [vmem:[%s2118_s6 + $0xa4] ss:$16 sps:$4 sm:$0xff]  }
  0x11   : > { %1612 = vmatprep.subr.bf16.mxu0 %v1841_v1  ;;  %v369_v10 = vld [vmem:[%s340_s29] sm:$0xf]  ;;  %v1754_v16 = vld [vmem:[%s2118_s6 + $0xac] ss:$16 sps:$4 sm:$0xff]   ;;  %v1752_v18 = vld [vmem:[%s2118_s6 + $0xa8] ss:$16 sps:$4 sm:$0xff]  }
  0x12   : > { %1621 = vmatpush3.bf16.msra.mxu1 %v1734_v2  ;;  %v1743_v13 = vld [vmem:[%s2118_s6 + $0xc0] ss:$16 sps:$4 sm:$0xff]   ;;  %v1757_v19 = vld [vmem:[%s2118_s6 + $0x84] ss:$16 sps:$4 sm:$0xff]   ;;  %v1758_v21 = vld [vmem:[%s2118_s6 + $0x88] ss:$16 sps:$4 sm:$0xff]  }
  0x13   : > { %855 = vmatprep.subr.bf16.mxu1 %v1742_v7  ;;  %v1749_v17 = vld [vmem:[%s2118_s6 + $0xa0] ss:$16 sps:$4 sm:$0xff]   ;;  %v1760_v22 = vld [vmem:[%s2118_s6 + $0x8c] ss:$16 sps:$4 sm:$0xff]   ;;  %v1763_v23 = vld [vmem:[%s2118_s6 + $0x64] ss:$16 sps:$4 sm:$0xff]  }
  0x14   : > { %1613 = vmatpush3.bf16.msra.mxu0 %v1736_v4  ;;  %v1755_v20 = vld [vmem:[%s2118_s6 + $0x80] ss:$16 sps:$4 sm:$0xff]   ;;  %v1766_v24 = vld [vmem:[%s2118_s6 + $0x6c] ss:$16 sps:$4 sm:$0xff]   ;;  %v1764_v26 = vld [vmem:[%s2118_s6 + $0x68] ss:$16 sps:$4 sm:$0xff]  }
  0x15   : > { %1623 = vmatmul.mubr.msk.bf16.vlgmr.msra.gmra.mxu1 %vm393_vm1, %v440_v9  ;;  %814 = vmatprep.subr.bf16.mxu0 %v1739_v5  ;;  %v1761_v25 = vld [vmem:[%s2118_s6 + $0x60] ss:$16 sps:$4 sm:$0xff]   ;;  %v1769_v27 = vld [vmem:[%s2118_s6 + $0x44] ss:$16 sps:$4 sm:$0xff]   ;;  %v1772_v28 = vld [vmem:[%s2118_s6 + $0x4c] ss:$16 sps:$4 sm:$0xff]  }
  0x16   : > { %856 = vmatpush1.bf16.msra.mxu1 %v1740_v6  ;;  %v1767_v29 = vld [vmem:[%s2118_s6 + $0x40] ss:$16 sps:$4 sm:$0xff]   ;;  %v1770_v30 = vld [vmem:[%s2118_s6 + $0x48] ss:$16 sps:$4 sm:$0xff]   ;;  %v1775_v31 = vld [vmem:[%s2118_s6 + $0x24] ss:$16 sps:$4 sm:$0xff]   ;;  %887 = vmatprep.mubr.bf16.mxu1 %v1843_v33 }
  0x17   : > { %1615 = vmatmul.mubr.msk.bf16.vlgmr.msra.gmra.mxu0 %vm393_vm1, %v369_v10  ;;  %857 = vmatprep.subr.bf16.mxu1 %v1748_v12  ;;  %v1778_v32 = vld [vmem:[%s2118_s6 + $0x2c] ss:$16 sps:$4 sm:$0xff]   ;;  %v1773_v34 = vld [vmem:[%s2118_s6 + $0x20] ss:$16 sps:$4 sm:$0xff]   ;;  %v1776_v35 = vld [vmem:[%s2118_s6 + $0x28] ss:$16 sps:$4 sm:$0xff]  }
  0x18   : > { %815 = vmatpush1.bf16.msra.mxu0 %v1737_v8  ;;  %846 = vmatprep.mubr.bf16.mxu0 %v1843_v33  ;;  %v1781_v36 = vld [vmem:[%s2118_s6 + $0x4] ss:$16 sps:$4 sm:$0xff]   ;;  %v1784_v37 = vld [vmem:[%s2118_s6 + $0xc] ss:$16 sps:$4 sm:$0xff]   ;;  %v1779_v38 = vld [vmem:[%s2118_s6] ss:$16 sps:$4 sm:$0xff]  }
  0x19   : > { %816 = vmatprep.subr.bf16.mxu0 %v1745_v11  ;;  %v1782_v39 = vld [vmem:[%s2118_s6 + $0x8] ss:$16 sps:$4 sm:$0xff]   ;;  %v1462_v40 = vld [vmem:[%s2117_s5] ss:$0 sm:$0xff]  ;;  %vm1001_vm3 = vcmask 64512  }
  0x1a   : > { %858 = vmatpush1.bf16.msra.mxu1 %v1746_v14  ;;  %v1458_v43 = vld [vmem:[%s2115_s3] ss:$0 sm:$0xff] }
  0x1b   : > { %859 = vmatprep.subr.bf16.mxu1 %v1754_v16 }
  0x1c   : > { %817 = vmatpush1.bf16.msra.mxu0 %v1743_v13 }
  0x1d   : > { %818 = vmatprep.subr.bf16.mxu0 %v1751_v15 }
  0x1e   : > { %860 = vmatpush1.bf16.msra.mxu1 %v1752_v18 }
  0x1f   : > { %861 = vmatprep.subr.bf16.mxu1 %v1760_v22 }
  0x20   : > { %819 = vmatpush1.bf16.msra.mxu0 %v1749_v17 }
  0x21   : > { %820 = vmatprep.subr.bf16.mxu0 %v1757_v19 }
  0x22   : > { %862 = vmatpush1.bf16.msra.mxu1 %v1758_v21 }
  0x23   : > { %863 = vmatprep.subr.bf16.mxu1 %v1766_v24 }
  0x24   : > { %821 = vmatpush1.bf16.msra.mxu0 %v1755_v20 }
  0x25   : > { %822 = vmatprep.subr.bf16.mxu0 %v1763_v23 }
  0x26   : > { %864 = vmatpush1.bf16.msra.mxu1 %v1764_v26 }
  0x27   : > { %865 = vmatprep.subr.bf16.mxu1 %v1772_v28 }
  0x28   : > { %823 = vmatpush1.bf16.msra.mxu0 %v1761_v25 }
  0x29   : > { %824 = vmatprep.subr.bf16.mxu0 %v1769_v27 }
  0x2a   : > { %866 = vmatpush1.bf16.msra.mxu1 %v1770_v30 }
  0x2b   : > { %867 = vmatprep.subr.bf16.mxu1 %v1778_v32 }
  0x2c   : > { %825 = vmatpush1.bf16.msra.mxu0 %v1767_v29 }
  0x2d   : > { %826 = vmatprep.subr.bf16.mxu0 %v1775_v31 }
  0x2e   : > { %868 = vmatpush1.bf16.msra.mxu1 %v1776_v35 }
  0x2f   : > { %869 = vmatprep.subr.bf16.mxu1 %v1784_v37 }
  0x30   : > { %827 = vmatpush1.bf16.msra.mxu0 %v1773_v34 }
  0x31   : > { %828 = vmatprep.subr.bf16.mxu0 %v1781_v36 }
  0x32   : > { %870 = vmatpush1.bf16.msra.mxu1 %v1782_v39 }
  0x33   : > { %1646 = vmatprep.subr.bf16.mxu1 %v1841_v1 }
  0x34   : > { %829 = vmatpush1.bf16.msra.mxu0 %v1779_v38 }
  0x35   : > { %1626 = vmatprep.subr.bf16.mxu0 %v1841_v1 }
  0xd5   : > { %v501_v41 = vpop.f32.mrf.mxu1 }
  0xd6   : > { %v502_v42 = vadd.f32 %v1462_v40, %v501_v41 }
  0xd7   : > { %v1624_v44 = vpop.f32.mrf.mxu1  ;;  %v431_v46 = vpop.f32.mrf.mxu0 }
  0xd8   : > { %v507_v45 = vmax.f32 %v502_v42, 0.0  ;;  %v432_v48 = vadd.f32 %v1458_v43, %v431_v46 }
  0xd9   : > { %v504_v47 = vpop.f32.mrf.mxu1  ;;  %v1616_v49 = vpop.f32.mrf.mxu0 }
  0xda   : > { %508 = vxpose.xlu0.b32.start.end [1/1] (short) %v507_v45, 128  ;;  %v437_v51 = vmax.f32 %v432_v48, 0.0 }
  0xdb   : > { %v1625_v50 = vpop.f32.mrf.mxu1  ;;  %v434_v52 = vpop.f32.mrf.mxu0 }
  0xdc   : > { %v438_v53 = vpack.c.bf16 %v437_v51, %v437_v51 }
  0xdd   : > { %v1617_v54 = vpop.f32.mrf.mxu0 }
  0xde   : > { %439 = vst [vmem:[#allocation2] sm:$0xf] %v438_v53 }
  0xe5   : > { %v621_v55 = vld [vmem:[#allocation2] sm:$0xf] }
  0xe6   : > { %847 = vmatmul.mubr.bf16.vlgmr.msra.gmra.mxu0 %v621_v55  ;;  %888 = vmatmul.mubr.bf16.vlgmr.msra.gmra.mxu1 %v621_v55 }
  0xe7   : > { %1642 = vmatprep.mubr.msk.bf16.mxu0 %vm1842_vm0, %v1841_v1  ;;  %1662 = vmatprep.mubr.msk.bf16.mxu1 %vm1842_vm0, %v1841_v1 }
 0x156   : > { %v524_v56 = vpop.trf.xlu0 }
 0x157   : > { %v1552_v57 = vpack.c.bf16 %v524_v56, %v524_v56 }
 0x159   : > { %605 = vst.msk [vmem:[#allocation3] sm:$0xf] %vm604_vm2, %v1552_v57 }
 0x15a   : > { %v525_v58 = vpop.trf.xlu0 }
 0x15b   : > { %v1553_v59 = vpack.c.bf16 %v525_v58, %v525_v58 }
 0x15d   : > { %606 = vst.msk [vmem:[#allocation3 + $0x4] sm:$0xf] %vm604_vm2, %v1553_v59 }
 0x15e   : > { %v526_v60 = vpop.trf.xlu0 }
 0x15f   : > { %v1554_v61 = vpack.c.bf16 %v526_v60, %v526_v60 }
 0x161   : > { %607 = vst.msk [vmem:[#allocation3 + $0x8] sm:$0xf] %vm604_vm2, %v1554_v61 }
 0x162   : > { %v527_v62 = vpop.trf.xlu0 }
 0x163   : > { %v1555_v63 = vpack.c.bf16 %v527_v62, %v527_v62 }
 0x164   : > { %v1799_v47 = vld [vmem:[#allocation3] sm:$0xff]  }
 0x165   : > { %608 = vst.msk [vmem:[#allocation3 + $0xc] sm:$0xf] %vm604_vm2, %v1555_v63  ;;  %v1800_v49 = vld [vmem:[#allocation3] sm:$0xff]  }
 0x166   : > { %v528_v0 = vpop.trf.xlu0 }
 0x167   : > { %v1556_v2 = vpack.c.bf16 %v528_v0, %v528_v0 }
 0x169   : > { %609 = vst.msk [vmem:[#allocation3 + $0x10] sm:$0xf] %vm604_vm2, %v1556_v2  ;;  %v1815_v2 = vld [vmem:[#allocation3] sm:$0xff]  }
 0x16a   : > { %v529_v3 = vpop.trf.xlu0 }
 0x16b   : > { %v1557_v4 = vpack.c.bf16 %v529_v3, %v529_v3  ;;  %v1816_v3 = vld [vmem:[#allocation3] sm:$0xff]  }
 0x16c   : > { %v1797_v45 = vld [vmem:[#allocation3 + $0x8] sm:$0xff]  }
 0x16d   : > { %610 = vst.msk [vmem:[#allocation3 + $0x14] sm:$0xf] %vm604_vm2, %v1557_v4  ;;  %v1798_v46 = vld [vmem:[#allocation3 + $0x8] sm:$0xff]  }
 0x16e   : > { %v530_v5 = vpop.trf.xlu0  ;;  %v1813_v63 = vld [vmem:[#allocation3 + $0x8] sm:$0xff]  }
 0x16f   : > { %v1558_v6 = vpack.c.bf16 %v530_v5, %v530_v5  ;;  %v1814_v0 = vld [vmem:[#allocation3 + $0x8] sm:$0xff]  }
 0x171   : > { %611 = vst.msk [vmem:[#allocation3 + $0x18] sm:$0xf] %vm604_vm2, %v1558_v6 }
 0x172   : > { %v531_v7 = vpop.trf.xlu0 }
 0x173   : > { %v1559_v8 = vpack.c.bf16 %v531_v7, %v531_v7 }
 0x174   : > { %v1795_v43 = vld [vmem:[#allocation3 + $0x10] sm:$0xff]  }
 0x175   : > { %612 = vst.msk [vmem:[#allocation3 + $0x1c] sm:$0xf] %vm604_vm2, %v1559_v8  ;;  %v1796_v44 = vld [vmem:[#allocation3 + $0x10] sm:$0xff]  }
 0x176   : > { %v532_v9 = vpop.trf.xlu0  ;;  %v1811_v61 = vld [vmem:[#allocation3 + $0x10] sm:$0xff]  }
 0x177   : > { %v1560_v10 = vpack.c.bf16 %v532_v9, %v532_v9  ;;  %v1812_v62 = vld [vmem:[#allocation3 + $0x10] sm:$0xff]  }
 0x179   : > { %613 = vst.msk [vmem:[#allocation3 + $0x20] sm:$0xf] %vm604_vm2, %v1560_v10 }
 0x17a   : > { %v533_v11 = vpop.trf.xlu0 }
 0x17b   : > { %v1561_v12 = vpack.c.bf16 %v533_v11, %v533_v11 }
 0x17c   : > { %v1793_v39 = vld [vmem:[#allocation3 + $0x18] sm:$0xff]  }
 0x17d   : > { %614 = vst.msk [vmem:[#allocation3 + $0x24] sm:$0xf] %vm604_vm2, %v1561_v12  ;;  %v1794_v40 = vld [vmem:[#allocation3 + $0x18] sm:$0xff]  }
 0x17e   : > { %v534_v13 = vpop.trf.xlu0  ;;  %v1809_v59 = vld [vmem:[#allocation3 + $0x18] sm:$0xff]  }
 0x17f   : > { %v1562_v14 = vpack.c.bf16 %v534_v13, %v534_v13  ;;  %v1810_v60 = vld [vmem:[#allocation3 + $0x18] sm:$0xff]  }
 0x181   : > { %615 = vst.msk [vmem:[#allocation3 + $0x28] sm:$0xf] %vm604_vm2, %v1562_v14 }
 0x182   : > { %v535_v15 = vpop.trf.xlu0 }
 0x183   : > { %v1563_v16 = vpack.c.bf16 %v535_v15, %v535_v15 }
 0x184   : > { %v1791_v33 = vld [vmem:[#allocation3 + $0x20] sm:$0xff]  }
 0x185   : > { %616 = vst.msk [vmem:[#allocation3 + $0x2c] sm:$0xf] %vm604_vm2, %v1563_v16  ;;  %v1792_v34 = vld [vmem:[#allocation3 + $0x20] sm:$0xff]  }
 0x186   : > { %v536_v17 = vpop.trf.xlu0  ;;  %v1807_v57 = vld [vmem:[#allocation3 + $0x20] sm:$0xff]  }
 0x187   : > { %v1564_v18 = vpack.c.bf16 %v536_v17, %v536_v17  ;;  %v1808_v58 = vld [vmem:[#allocation3 + $0x20] sm:$0xff]  }
 0x189   : > { %617 = vst.msk [vmem:[#allocation3 + $0x30] sm:$0xf] %vm604_vm2, %v1564_v18 }
 0x18a   : > { %v537_v19 = vpop.trf.xlu0 }
 0x18b   : > { %v1565_v20 = vpack.c.bf16 %v537_v19, %v537_v19 }
 0x18c   : > { %v1789_v29 = vld [vmem:[#allocation3 + $0x28] sm:$0xff]  }
 0x18d   : > { %618 = vst.msk [vmem:[#allocation3 + $0x34] sm:$0xf] %vm604_vm2, %v1565_v20  ;;  %v1790_v30 = vld [vmem:[#allocation3 + $0x28] sm:$0xff]  }
 0x18e   : > { %v538_v21 = vpop.trf.xlu0  ;;  %v1805_v55 = vld [vmem:[#allocation3 + $0x28] sm:$0xff]  }
 0x18f   : > { %v1566_v22 = vpack.c.bf16 %v538_v21, %v538_v21  ;;  %v1806_v56 = vld [vmem:[#allocation3 + $0x28] sm:$0xff]  }
 0x191   : > { %619 = vst.msk [vmem:[#allocation3 + $0x38] sm:$0xf] %vm604_vm2, %v1566_v22 }
 0x192   : > { %v539_v23 = vpop.trf.xlu0 }
 0x193   : > { %v1567_v24 = vpack.c.bf16 %v539_v23, %v539_v23 }
 0x194   : > { %v1787_v27 = vld [vmem:[#allocation3 + $0x30] sm:$0xff]  }
 0x195   : > { %620 = vst.msk [vmem:[#allocation3 + $0x3c] sm:$0xf] %vm604_vm2, %v1567_v24  ;;  %v1788_v28 = vld [vmem:[#allocation3 + $0x30] sm:$0xff]  }
 0x196   : > { %v1803_v53 = vld [vmem:[#allocation3 + $0x30] sm:$0xff]  }
 0x197   : > { %v1804_v54 = vld [vmem:[#allocation3 + $0x30] sm:$0xff]  }
 0x19c   : > { %v1785_v25 = vld [vmem:[#allocation3 + $0x38] sm:$0xff]  }
 0x19d   : > { %v1786_v26 = vld [vmem:[#allocation3 + $0x38] sm:$0xff]   ;;  %1627 = vmatpush3.bf16.msra.mxu0 %v1785_v25 }
 0x19e   : > { %1647 = vmatpush3.bf16.msra.mxu1 %v1786_v26  ;;  %1628 = vmatprep.subr.bf16.mxu0 %v1841_v1  ;;  %v1801_v51 = vld [vmem:[#allocation3 + $0x38] sm:$0xff]  }
 0x19f   : > { %1648 = vmatprep.subr.bf16.mxu1 %v1841_v1  ;;  %v1802_v52 = vld [vmem:[#allocation3 + $0x38] sm:$0xff]  }
 0x1a1   : > { %1629 = vmatpush3.bf16.msra.mxu0 %v1787_v27 }
 0x1a2   : > { %1649 = vmatpush3.bf16.msra.mxu1 %v1788_v28  ;;  %1630 = vmatprep.subr.bf16.mxu0 %v1841_v1 }
 0x1a3   : > { %1650 = vmatprep.subr.bf16.mxu1 %v1841_v1 }
 0x1a5   : > { %1631 = vmatpush3.bf16.msra.mxu0 %v1789_v29 }
 0x1a6   : > { %1651 = vmatpush3.bf16.msra.mxu1 %v1790_v30  ;;  %1632 = vmatprep.subr.bf16.mxu0 %v1841_v1  ;;  %v848_v31 = vpop.f32.mrf.mxu0  ;;  %v2062_v32 = vpop.f32.mrf.mxu1 }
 0x1a7   : > { %1652 = vmatprep.subr.bf16.mxu1 %v1841_v1  ;;  %v896_v48 = vpack.c.bf16 %v848_v31, %v848_v31  ;;  %v1110_v4 = vpack.c.bf16 %v2062_v32, %v2062_v32 }
 0x1a8   : > { %v850_v35 = vpop.f32.mrf.mxu0  ;;  %v2065_v36 = vpop.f32.mrf.mxu1 }
 0x1a9   : > { %1633 = vmatpush3.bf16.msra.mxu0 %v1791_v33  ;;  %v1003_v50 = vpack.c.bf16 %v850_v35, %v850_v35  ;;  %v1217_v5 = vpack.c.bf16 %v2065_v36, %v2065_v36 }
 0x1aa   : > { %1653 = vmatpush3.bf16.msra.mxu1 %v1792_v34  ;;  %1634 = vmatprep.subr.bf16.mxu0 %v1841_v1  ;;  %v852_v37 = vpop.f32.mrf.mxu0  ;;  %v893_v38 = vpop.f32.mrf.mxu1 }
 0x1ab   : > { %1654 = vmatprep.subr.bf16.mxu1 %v1841_v1 }
 0x1ac   : > { %v853_v41 = vpop.f32.mrf.mxu0  ;;  %v894_v42 = vpop.f32.mrf.mxu1 }
 0x1ad   : > { %1635 = vmatpush3.bf16.msra.mxu0 %v1793_v39 }
 0x1ae   : > { %1655 = vmatpush3.bf16.msra.mxu1 %v1794_v40  ;;  %1636 = vmatprep.subr.bf16.mxu0 %v1841_v1 }
 0x1af   : > { %1656 = vmatprep.subr.bf16.mxu1 %v1841_v1 }
 0x1b1   : > { %1637 = vmatpush3.bf16.msra.mxu0 %v1795_v43 }
 0x1b2   : > { %1657 = vmatpush3.bf16.msra.mxu1 %v1796_v44  ;;  %1638 = vmatprep.subr.bf16.mxu0 %v1841_v1 }
 0x1b3   : > { %1658 = vmatprep.subr.bf16.mxu1 %v1841_v1 }
 0x1b5   : > { %1639 = vmatpush3.bf16.msra.mxu0 %v1797_v45 }
 0x1b6   : > { %1659 = vmatpush3.bf16.msra.mxu1 %v1798_v46  ;;  %1640 = vmatprep.subr.bf16.mxu0 %v1841_v1 }
 0x1b7   : > { %1660 = vmatprep.subr.bf16.mxu1 %v1841_v1 }
 0x1b9   : > { %1641 = vmatpush3.bf16.msra.mxu0 %v1799_v47 }
 0x1ba   : > { %1661 = vmatpush3.bf16.msra.mxu1 %v1800_v49  ;;  %1666 = vmatprep.subr.bf16.mxu0 %v1841_v1 }
 0x1bb   : > { %1686 = vmatprep.subr.bf16.mxu1 %v1841_v1 }
 0x1bc   : > { %1643 = vmatmul.mubr.bf16.vlgmr.msra.gmra.mxu0 %v896_v48 }
 0x1bd   : > { %1663 = vmatmul.mubr.bf16.vlgmr.msra.gmra.mxu1 %v1003_v50  ;;  %1667 = vmatpush3.bf16.msra.mxu0 %v1801_v51 }
 0x1be   : > { %1687 = vmatpush3.bf16.msra.mxu1 %v1802_v52  ;;  %1668 = vmatprep.subr.bf16.mxu0 %v1841_v1 }
 0x1bf   : > { %1688 = vmatprep.subr.bf16.mxu1 %v1841_v1  ;;  %1682 = vmatprep.mubr.msk.bf16.mxu0 %vm1842_vm0, %v1841_v1 }
 0x1c0   : > { %1702 = vmatprep.mubr.msk.bf16.mxu1 %vm1842_vm0, %v1841_v1 }
 0x1c1   : > { %1669 = vmatpush3.bf16.msra.mxu0 %v1803_v53 }
 0x1c2   : > { %1689 = vmatpush3.bf16.msra.mxu1 %v1804_v54  ;;  %1670 = vmatprep.subr.bf16.mxu0 %v1841_v1 }
 0x1c3   : > { %1690 = vmatprep.subr.bf16.mxu1 %v1841_v1 }
 0x1c5   : > { %1671 = vmatpush3.bf16.msra.mxu0 %v1805_v55 }
 0x1c6   : > { %1691 = vmatpush3.bf16.msra.mxu1 %v1806_v56  ;;  %1672 = vmatprep.subr.bf16.mxu0 %v1841_v1 }
 0x1c7   : > { %1692 = vmatprep.subr.bf16.mxu1 %v1841_v1 }
 0x1c9   : > { %1673 = vmatpush3.bf16.msra.mxu0 %v1807_v57 }
 0x1ca   : > { %1693 = vmatpush3.bf16.msra.mxu1 %v1808_v58  ;;  %1674 = vmatprep.subr.bf16.mxu0 %v1841_v1 }
 0x1cb   : > { %1694 = vmatprep.subr.bf16.mxu1 %v1841_v1 }
 0x1cd   : > { %1675 = vmatpush3.bf16.msra.mxu0 %v1809_v59 }
 0x1ce   : > { %1695 = vmatpush3.bf16.msra.mxu1 %v1810_v60  ;;  %1676 = vmatprep.subr.bf16.mxu0 %v1841_v1 }
 0x1cf   : > { %1696 = vmatprep.subr.bf16.mxu1 %v1841_v1 }
 0x1d1   : > { %1677 = vmatpush3.bf16.msra.mxu0 %v1811_v61 }
 0x1d2   : > { %1697 = vmatpush3.bf16.msra.mxu1 %v1812_v62  ;;  %1678 = vmatprep.subr.bf16.mxu0 %v1841_v1 }
 0x1d3   : > { %1698 = vmatprep.subr.bf16.mxu1 %v1841_v1 }
 0x1d5   : > { %1679 = vmatpush3.bf16.msra.mxu0 %v1813_v63 }
 0x1d6   : > { %1699 = vmatpush3.bf16.msra.mxu1 %v1814_v0  ;;  %1680 = vmatprep.subr.bf16.mxu0 %v1841_v1 }
 0x1d7   : > { %1700 = vmatprep.subr.bf16.mxu1 %v1841_v1 }
 0x1d9   : > { %1681 = vmatpush3.bf16.msra.mxu0 %v1815_v2 }
 0x1da   : > { %1701 = vmatpush3.bf16.msra.mxu1 %v1816_v3 }
 0x1dc   : > { %1683 = vmatmul.mubr.bf16.vlgmr.msra.gmra.mxu0 %v1110_v4 }
 0x1dd   : > { %1703 = vmatmul.mubr.bf16.vlgmr.msra.gmra.mxu1 %v1217_v5 }
 0x27c   : > { %v995_v6 = vpop.f32.mrf.mxu0 }
 0x27d   : > { %1002 = vst.msk [vmem:[%s362_s15] sm:$0xff] %vm1001_vm3, %v995_v6  ;;  %v1102_v1 = vpop.f32.mrf.mxu1 }
 0x27e   : > { %1530 = vst.msk [vmem:[%s362_s15 + $0x8] sm:$0xff] %vm1001_vm3, %v1102_v1  ;;  %v1644_v7 = vpop.f32.mrf.mxu0 }
 0x27f   : > { %v1664_v8 = vpop.f32.mrf.mxu1 }
 0x280   : > { %v998_v9 = vpop.f32.mrf.mxu0 }
 0x281   : > { %v1105_v10 = vpop.f32.mrf.mxu1 }
 0x282   : > { %v1645_v11 = vpop.f32.mrf.mxu0 }
 0x283   : > { %v1665_v12 = vpop.f32.mrf.mxu1 }
 0x29c   : > { %v1209_v13 = vpop.f32.mrf.mxu0 }
 0x29d   : > { %1539 = vst.msk [vmem:[%s362_s15 + $0x10] sm:$0xff] %vm1001_vm3, %v1209_v13  ;;  %v1316_v14 = vpop.f32.mrf.mxu1 }
 0x29e   : > { %1548 = vst.msk [vmem:[%s362_s15 + $0x18] sm:$0xff] %vm1001_vm3, %v1316_v14  ;;  %v1684_v15 = vpop.f32.mrf.mxu0 }
 0x29f   : > { %v1704_v16 = vpop.f32.mrf.mxu1 }
 0x2a0   : > { %v1212_v17 = vpop.f32.mrf.mxu0 }
 0x2a1   : > { %v1319_v18 = vpop.f32.mrf.mxu1 }
 0x2a2   : > { %v1685_v19 = vpop.f32.mrf.mxu0 }
 0x2a3   : > { %v1705_v20 = vpop.f32.mrf.mxu1 }
 0x2a4 PF: > { %s17_s26 = sadd.s32 1, %s1839_s26   ;;  %s2120_s24 = smov %s1835_s25 }
 0x2a5   : > { %p14_p5 = scmp.ge.s32.totalorder %s17_s26, 4   ;;  %s2121_s25 = smov %s2123_s27 }
 0x2a7   :  { %16 = sbr.rel (!%p14_p5) target bundleno = 2 (0x2), region = 91 }

</bundles_post_ra>
